<compile_context>
chip_gen: v5e
topology: v5e:2x2
jax: 0.10.0
libtpu: 0.0.40
codegen_flags: <defaults>
</compile_context>

<pallas_src>
import jax
import jax.numpy as jnp
import numpy as np
from jax.experimental import pallas as pl
from jax.experimental.pallas import tpu as pltpu

_NEG_SLOPE = 0.2


def _dfblk_kernel(aff_ref, x_ref, o_ref):
    # x block:   (1, C, T)    -- spatial tile on lanes, channels on sublanes.
    # aff block: (1, 4, C, 1) -- [gamma0, beta0, gamma1, beta1], each (C, 1),
    #                            broadcasting over the lane (spatial) axis.
    x = x_ref[...]
    aff = aff_ref[0]                       # (4, C, 1)
    g0, b0, g1, b1 = aff[0], aff[1], aff[2], aff[3]

    h = g0 * x + b0                        # affine0
    h = jnp.maximum(h, _NEG_SLOPE * h)     # LeakyReLU(0.2): mul + max, no select
    h = g1 * h + b1                        # affine1
    h = jnp.maximum(h, _NEG_SLOPE * h)
    o_ref[...] = h.astype(o_ref.dtype)


def _pick_spatial_tile(HW, C, itemsize, N, max_block_bytes=2 << 20):
    """Lane-dense spatial tile (multiple of 128) sized by a VMEM byte budget.

    Budget counts *resident* bytes (C padded to sublane granularity), so
    small-C blocks do not silently overshoot VMEM, and blocks land in the
    0.5-2 MiB range where the ~0.35 us per-grid-step overhead is amortized.
    """
    sub = 8 * max(1, 4 // int(itemsize))             # sublane pack: f32->8, bf16->16
    c_pad = ((C + sub - 1) // sub) * sub
    bytes_per_col = c_pad * 128 * int(itemsize)      # one 128-lane column of a block
    max_cols = max(1, max_block_bytes // bytes_per_col)
    n_cols = (HW + 127) // 128
    cols = min(max_cols, n_cols)
    if N == 1 and n_cols >= 2:
        # Keep >= 2 spatial blocks so both v7x TensorCores get work.
        cols = min(cols, (n_cols + 1) // 2)
    T = cols * 128
    if T >= HW:
        T = HW    # single spatial block: full-extent last dim is always legal
    return T


def dfblk_forward(x_nchw, y, params, *, max_block_bytes=2 << 20):
    N, C, H, W = x_nchw.shape
    HW = H * W
    dt = x_nchw.dtype
    itemsize = jnp.dtype(dt).itemsize
    x_flat = x_nchw.reshape(N, C, HW)                # zero-cost reshape, no transpose

    # Condition MLPs hoisted out of the kernel (tiny matmuls, plain XLA).
    def mlp(w1, b1, w2, b2):
        h = jnp.maximum(y @ w1 + b1, 0.0)            # Linear + ReLU
        return h @ w2 + b2                           # Linear -> (N, C)

    g0 = mlp(params["w1g0"], params["b1g0"], params["w2g0"], params["b2g0"])
    be0 = mlp(params["w1b0"], params["b1b0"], params["w2b0"], params["b2b0"])
    g1 = mlp(params["w1g1"], params["b1g1"], params["w2g1"], params["b2g1"])
    be1 = mlp(params["w1b1"], params["b1b1"], params["w2b1"], params["b2b1"])
    # Pack the four (N, C) affine params into one (N, 4, C, 1) operand: one
    # BlockSpec instead of four; C on sublanes broadcasts over the lane axis.
    aff = jnp.stack([g0, be0, g1, be1], axis=1).astype(dt)[..., None]

    T = _pick_spatial_tile(HW, C, itemsize, N, max_block_bytes)
    n_hw = pl.cdiv(HW, T)                            # uneven tail blocks are masked

    aff_spec = pl.BlockSpec((1, 4, C, 1), lambda n, s: (n, 0, 0, 0))
    x_spec = pl.BlockSpec((1, C, T), lambda n, s: (n, 0, s))

    cost = pl.CostEstimate(
        flops=6 * N * C * HW,
        transcendentals=0,
        bytes_accessed=2 * N * C * HW * itemsize + aff.size * itemsize,
    )

    out = pl.pallas_call(
        _dfblk_kernel,
        out_shape=jax.ShapeDtypeStruct((N, C, HW), dt),
        grid=(N, n_hw),
        in_specs=[aff_spec, x_spec],
        out_specs=x_spec,
        compiler_params=pltpu.CompilerParams(
            dimension_semantics=("parallel", "parallel"),
            vmem_limit_bytes=32 * 1024 * 1024,       # safe on v5e/v6e/v7x; ~8 MiB used
        ),
        cost_estimate=cost,
    )(aff, x_flat)

    return out.reshape(N, C, H, W)


def init_params(key, cond_dim, in_ch, *, module_init=False):
    """Parameters for the two Affine blocks (gamma0/beta0/gamma1/beta1 MLPs).

    module_init=True reproduces the real DFBLK initialization
    (linear2.weight = 0, gamma linear2.bias = 1, beta linear2.bias = 0); the
    default random init exercises the full compute path.
    """
    def linear(k, fan_in, fan_out):
        kw, kb = jax.random.split(k)
        bound = 1.0 / np.sqrt(fan_in)
        w = jax.random.uniform(kw, (fan_in, fan_out), jnp.float32, -bound, bound)
        b = jax.random.uniform(kb, (1, fan_out), jnp.float32, -bound, bound)
        return w, b

    keys = jax.random.split(key, 8)
    params = {}
    for i, tag in enumerate(["g0", "b0", "g1", "b1"]):
        w1, b1 = linear(keys[2 * i], cond_dim, in_ch)
        w2, b2 = linear(keys[2 * i + 1], in_ch, in_ch)
        if module_init:
            w2 = jnp.zeros_like(w2)
            b2 = jnp.full_like(b2, 1.0 if tag.startswith("g") else 0.0)
        params[f"w1{tag}"] = w1
        params[f"b1{tag}"] = b1
        params[f"w2{tag}"] = w2
        params[f"b2{tag}"] = b2
    return params


def ref_forward(x, y, p):
    # Pure-JAX reference mirroring the PyTorch forward (NCHW).
    def mlp(w1, b1, w2, b2):
        h = jnp.maximum(y @ w1 + b1, 0.0)
        return h @ w2 + b2                           # (N, C)

    def lrelu(v):
        return jnp.where(v >= 0.0, v, _NEG_SLOPE * v)

    g0 = mlp(p["w1g0"], p["b1g0"], p["w2g0"], p["b2g0"])[:, :, None, None]
    be0 = mlp(p["w1b0"], p["b1b0"], p["w2b0"], p["b2b0"])[:, :, None, None]
    g1 = mlp(p["w1g1"], p["b1g1"], p["w2g1"], p["b2g1"])[:, :, None, None]
    be1 = mlp(p["w1b1"], p["b1b1"], p["w2b1"], p["b2b1"])[:, :, None, None]
    h = lrelu(g0 * x + be0)
    return lrelu(g1 * h + be1)


if __name__ == "__main__":
    N, C, H, W = 2, 4, 16, 16
    cond_dim = 8

    key = jax.random.PRNGKey(0)
    k_x, k_y, k_p = jax.random.split(key, 3)
    x = jax.random.normal(k_x, (N, C, H, W), jnp.float32)
    y = jax.random.normal(k_y, (N, cond_dim), jnp.float32)

    # Full compute path with random weights.
    params = init_params(k_p, cond_dim, C)
    out = jax.block_until_ready(dfblk_forward(x, y, params))
    assert out.shape == (N, C, H, W)
    np.testing.assert_allclose(np.asarray(out), np.asarray(ref_forward(x, y, params)),
                               rtol=1e-5, atol=1e-5)

    # Parity with the real module's initialization (gamma == 1, beta == 0).
    params_m = init_params(k_p, cond_dim, C, module_init=True)
    out_m = jax.block_until_ready(dfblk_forward(x, y, params_m))
    np.testing.assert_allclose(np.asarray(out_m), np.asarray(ref_forward(x, y, params_m)),
                               rtol=1e-5, atol=1e-5)

    print("KERNEL_OK")
</pallas_src>

<mosaic_0001>
module attributes {stable_mosaic.version = 11 : i64} {
  func.func @_dfblk_kernel(%arg0: i32, %arg1: i32, %arg2: memref<1x4x4x1xf32, #tpu.memory_space<vmem>>, %arg3: memref<1x4x256xf32, #tpu.memory_space<vmem>>, %arg4: memref<1x4x256xf32, #tpu.memory_space<vmem>>) attributes {dimension_semantics = [#tpu.dimension_semantics<parallel>, #tpu.dimension_semantics<parallel>], iteration_bounds = array<i64: 2, 1>, scalar_prefetch = 0 : i64, scratch_operands = 0 : i64, tpu.core_type = #tpu.core_type<tc>, window_params = [{transform_indices = @transform_0, window_bounds = array<i64: 1, 4, 4, 1>}, {transform_indices = @transform_1, window_bounds = array<i64: 1, 4, 256>}, {transform_indices = @transform_2, window_bounds = array<i64: 1, 4, 256>}]} {
    %c0 = arith.constant 0 : index
    %c0_0 = arith.constant 0 : index
    %c0_1 = arith.constant 0 : index
    %0 = vector.load %arg3[%c0, %c0_0, %c0_1] : memref<1x4x256xf32, #tpu.memory_space<vmem>>, vector<1x4x256xf32>
    %c0_2 = arith.constant 0 : index
    %c0_3 = arith.constant 0 : index
    %c0_4 = arith.constant 0 : index
    %c0_5 = arith.constant 0 : index
    %1 = vector.load %arg2[%c0_2, %c0_3, %c0_4, %c0_5] : memref<1x4x4x1xf32, #tpu.memory_space<vmem>>, vector<1x4x4x1xf32>
    %2 = vector.shape_cast %1 : vector<1x4x4x1xf32> to vector<4x4x1xf32>
    %3 = vector.extract_strided_slice %2 {offsets = [0, 0, 0], sizes = [1, 4, 1], strides = [1, 1, 1]} : vector<4x4x1xf32> to vector<1x4x1xf32>
    %4 = vector.shape_cast %3 : vector<1x4x1xf32> to vector<4x1xf32>
    %5 = vector.extract_strided_slice %2 {offsets = [1, 0, 0], sizes = [1, 4, 1], strides = [1, 1, 1]} : vector<4x4x1xf32> to vector<1x4x1xf32>
    %6 = vector.shape_cast %5 : vector<1x4x1xf32> to vector<4x1xf32>
    %7 = vector.extract_strided_slice %2 {offsets = [2, 0, 0], sizes = [1, 4, 1], strides = [1, 1, 1]} : vector<4x4x1xf32> to vector<1x4x1xf32>
    %8 = vector.shape_cast %7 : vector<1x4x1xf32> to vector<4x1xf32>
    %9 = vector.extract_strided_slice %2 {offsets = [3, 0, 0], sizes = [1, 4, 1], strides = [1, 1, 1]} : vector<4x4x1xf32> to vector<1x4x1xf32>
    %10 = vector.shape_cast %9 : vector<1x4x1xf32> to vector<4x1xf32>
    %11 = vector.shape_cast %4 : vector<4x1xf32> to vector<1x4x1xf32>
    %12 = vector.broadcast %11 : vector<1x4x1xf32> to vector<1x4x256xf32>
    %13 = arith.mulf %12, %0 : vector<1x4x256xf32>
    %14 = vector.shape_cast %6 : vector<4x1xf32> to vector<1x4x1xf32>
    %15 = vector.broadcast %14 : vector<1x4x1xf32> to vector<1x4x256xf32>
    %16 = arith.addf %13, %15 : vector<1x4x256xf32>
    %cst = arith.constant 2.000000e-01 : f32
    %17 = vector.broadcast %cst : f32 to vector<1x4x256xf32>
    %18 = arith.mulf %17, %16 : vector<1x4x256xf32>
    %19 = arith.maximumf %16, %18 : vector<1x4x256xf32>
    %20 = vector.shape_cast %8 : vector<4x1xf32> to vector<1x4x1xf32>
    %21 = vector.broadcast %20 : vector<1x4x1xf32> to vector<1x4x256xf32>
    %22 = arith.mulf %21, %19 : vector<1x4x256xf32>
    %23 = vector.shape_cast %10 : vector<4x1xf32> to vector<1x4x1xf32>
    %24 = vector.broadcast %23 : vector<1x4x1xf32> to vector<1x4x256xf32>
    %25 = arith.addf %22, %24 : vector<1x4x256xf32>
    %cst_6 = arith.constant 2.000000e-01 : f32
    %26 = vector.broadcast %cst_6 : f32 to vector<1x4x256xf32>
    %27 = arith.mulf %26, %25 : vector<1x4x256xf32>
    %28 = arith.maximumf %25, %27 : vector<1x4x256xf32>
    %c0_7 = arith.constant 0 : index
    %c0_8 = arith.constant 0 : index
    %c0_9 = arith.constant 0 : index
    %29 = vector.load %arg4[%c0_7, %c0_8, %c0_9] : memref<1x4x256xf32, #tpu.memory_space<vmem>>, vector<1x4x256xf32>
    tpu.vector_store %arg4[%c0_7, %c0_8, %c0_9], %28 {strides = array<i32>} : memref<1x4x256xf32, #tpu.memory_space<vmem>>, vector<1x4x256xf32>,
    return
  }
  func.func @transform_0(%arg0: i32, %arg1: i32) -> (i32, i32, i32, i32) {
    %c0_i32 = arith.constant 0 : i32
    %c0_i32_0 = arith.constant 0 : i32
    %c0_i32_1 = arith.constant 0 : i32
    %c0_i32_2 = arith.constant 0 : i32
    return %arg0, %c0_i32, %c0_i32_0, %c0_i32_1 : i32, i32, i32, i32
  }
  func.func @transform_1(%arg0: i32, %arg1: i32) -> (i32, i32, i32) {
    %c0_i32 = arith.constant 0 : i32
    %c0_i32_0 = arith.constant 0 : i32
    return %arg0, %c0_i32, %arg1 : i32, i32, i32
  }
  func.func @transform_2(%arg0: i32, %arg1: i32) -> (i32, i32, i32) {
    %c0_i32 = arith.constant 0 : i32
    %c0_i32_0 = arith.constant 0 : i32
    return %arg0, %c0_i32, %arg1 : i32, i32, i32
  }
}

</mosaic_0001>

<bundles_post_ra>
// kernel: tpu_custom_call.1
= control target key start
LH: loop header
LB: loop body
LE: loop exit
PB: predicated region body
PF: predicated region fallthrough
CT: control target
= control target key end

     0   :  { %7 = vsyncpa [#allocation3], 0  ;;  %s626_s0 = inlined_call_operand.vmem [shape: f32[2,4,4,1], index: 0, kind: input, shape index: {}]   ;;  %s627_s1 = inlined_call_operand.vmem [shape: f32[2,4,256], index: 1, kind: input, shape index: {}]   ;;  %s628_s2 = inlined_call_operand.hbm [shape: f32[2,4,256], index: 2, kind: output, shape index: {}]  }
   0x1   :  { %9 = vsyncpa [#allocation3 + $0x1], 0  ;;  %s526_s9 = smov 0   ;;  %s528_s10 = smov 0  }
   0x2   :  { %s530_s11 = smov 0   ;;  %s532_s12 = smov 0  }
   0x3   :  { %s534_s13 = smov 0   ;;  %s536_s14 = smov 0  }
   0x4 LB: > { %s354_s15 = sadd.s32 4294967295, %s508_s14   ;;  %s355_s16 = sadd.s32 4294967294, %s508_s14   ;;  %s508_s14 = sphi %s536_s14, %s15_s14   ;;  %s504_s13 = sphi %s534_s13, %s635_s13   ;;  %s500_s12 = sphi %s532_s12, %s634_s12   ;;  %s496_s11 = sphi %s530_s11, %s633_s11   ;;  %s492_s10 = sphi %s528_s10, %s632_s10   ;;  %s488_s9 = sphi %s526_s9, %s631_s9  }
   0x5   : > { %s27_s17 = sadd.s32 1, %s504_s13  ;;  %s90_s18 = sadd.s32 1, %s496_s11 }
   0x6   : > { %p29_p0 = scmp.ge.s32.totalorder %s27_s17, 2  ;;  %p100_p1 = scmp.ne.s32.totalorder %s496_s11, %s492_s10 }
   0x7   : > { %p101_p2 = scmp.eq.s32.totalorder %s354_s15, 1  ;;  %p106_p3 = scmp.ne.s32.totalorder %s492_s10, %s488_s9 }
   0x8   : > { %s637_s17 = smov (%p29_p0, %s27_s17), 0  ;;  %p107_p5 = scmp.eq.s32.totalorder %s355_s16, 1 }
   0x9   : > { %p566_p4 = por %p101_p2, %p100_p1  ;;  %s85_s20 = ssub.s32 %s504_s13, %s637_s17 }
   0xa   : > { %p358_p6 = scmp.ge.s32.totalorder %s508_s14, 1  ;;  %p88_p7 = scmp.eq.s32.totalorder %s85_s20, 0 }
   0xb   : > { %p573_p8 = por %p107_p5, %p106_p3  ;;  %p146_p9 = scmp.lt.s32.totalorder %s508_s14, 3 }
   0xc   : > { %s579_s22 = scalar_select %p88_p7, %s496_s11, %s90_s18  }
   0xd   : > { %p147_p10 = pnand %p358_p6, %p146_p9 }
   0xe   : > { %p177_p11 = scmp.lt.s32.totalorder (!%p147_p10), %s500_s12, 1  ;;  %s174_s4 = sand.u32 (!%p147_p10), 1, %s492_s10  }
   0xf   : > { %150 = sbr.rel (%p147_p10) target bundleno = 169 (0xa9), region = 28  ;;  %s359_s5 = sshll.u32 (!%p147_p10), %s174_s4, 3 }
  0x10   : > { %s371_s6 = sshll.u32 (!%p147_p10), %s500_s12, 3  ;;  %s176_s16 = scalar_lea.vmem (!%p147_p10), [#allocation2], %s359_s5 }
  0x11   : > { %s261_s15 = scalar_lea.hbm (!%p147_p10), %s628_s2, %s371_s6  ;;  %s263_s18 = sshll.u32 (!%p147_p10), %s176_s16, 4  ;;  %s264_s18 = int_to_ptr.vmem [resolvable:$true] %s263_s18 }
  0x12   : > { %s265_s20 = sshll.u32 (!%p147_p10), %s261_s15, 4  ;;  %s450_s27 = scalar_lea.hbm (!%p147_p10), %s628_s2, 16  ;;  %s266_s20 = int_to_ptr.hbm [resolvable:$true] %s265_s20 }
  0x14   : > { %v510_v0 = vmov 0   ;;  %s178_s23 = scalar_select %p177_p11, %s500_s12, 1  ;;  %vm243_vm0 = vcmask 1043456  }
  0x15   : > { %429 = vset.pattern.permute.xlu1 %v510_v0  ;;  %428 = vset.pattern.permute.xlu0 %v510_v0  ;;  %s248_s12 = scalar_lea.sflag [#allocation3], %s174_s4 }
  0x16   : > { %s369_s24 = sshll.u32 %s178_s23, 4  ;;  %s370_s25 = sshll.u32 %s178_s23, 3 }
  0x17   : > { %s181_s28 = scalar_lea.vmem %s626_s0, %s369_s24  ;;  %s190_s3 = scalar_lea.vmem %s627_s1, %s370_s25 }
  0x18   : > { %v193_v1 = vld [vmem:[%s190_s3] sm:$0xff]  ;;  %v196_v2 = vld [vmem:[%s181_s28 + $0x8] sm:$0xf]  ;;  %v197_v4 = vld [vmem:[%s181_s28 + $0xc] sm:$0xf]  ;;  %s444_s23 = sshra.s32 %s266_s20, 4  ;;  %s445_s23 = int_to_ptr.hbm [resolvable:$true] %s444_s23 }
  0x19   : > { %v194_v3 = vld [vmem:[%s181_s28] sm:$0xf]  ;;  %204 = vst [vmem:[#allocation1] ss:$2 sm:$0xff] %v193_v1  ;;  %224 = vperm.xlu1 %429, %v196_v2   ;;  %v195_v5 = vld [vmem:[%s181_s28 + $0x4] sm:$0xf]  ;;  %p451_p1 = scmp.lt.s32.totalorder %s445_s23, %s628_s2 }
  0x1a   : > { %200 = vperm.xlu0 %428, %v194_v3   ;;  %s446_s24 = scalar_lea.hbm %s445_s23, 8 }
  0x1b   : > { %p447_p12 = scmp.ne.s32.totalorder %s445_s23, %s446_s24  ;;  %p452_p2 = scmp.lt.s32.totalorder %s450_s27, %s446_s24 }
  0x1d   : > { %p448_p13 = pnand %p447_p12, %p566_p4  ;;  %p453_p3 = por %p452_p2, %p451_p1 }
  0x1f   : > { %p449_p0 = pneg %p448_p13 }
  0x20   : > { %v205_v7 = vld.sshfl [vmem:[#allocation1] sm:$0xff pattern:$0x75316420]  ;;  %v206_v8 = vld.sshfl [vmem:[#allocation1 + $0x8] sm:$0xff pattern:$0x75316420] }
  0x21   : > { %231 = vperm.xlu1 %429, %v197_v4   ;;  %p454_p5 = pnand %p453_p3, %p449_p0 }
  0x22   : > { %213 = vperm.xlu0 %428, %v195_v5  }
  0x8b   : > { %v225_v9 = vpop.permute.xlu1 %224 }
  0x8c   : > { %v201_v6 = vpop.permute.xlu0 %200 }
  0x8d   : > { %v209_v10 = vmul.f32 %v205_v7, %v201_v6  ;;  %v210_v11 = vmul.f32 %v206_v8, %v201_v6 }
  0x93   : > { %v232_v21 = vpop.permute.xlu1 %231 }
  0x94   : > { %v214_v12 = vpop.permute.xlu0 %213 }
  0x95   : > { %v216_v13 = vadd.f32 %v214_v12, %v209_v10  ;;  %v217_v14 = vadd.f32 %v214_v12, %v210_v11 }
  0x97   : > { %v218_v15 = vmul.f32 0.2, %v216_v13  ;;  %v219_v16 = vmul.f32 0.2, %v217_v14 }
  0x99   : > { %v220_v17 = vmax.f32 %v216_v13, %v218_v15  ;;  %v221_v18 = vmax.f32 %v217_v14, %v219_v16 }
  0x9b   : > { %v227_v19 = vmul.f32 %v225_v9, %v220_v17  ;;  %v228_v20 = vmul.f32 %v225_v9, %v221_v18 }
  0x9d   : > { %v234_v22 = vadd.f32 %v232_v21, %v227_v19  ;;  %v235_v23 = vadd.f32 %v232_v21, %v228_v20 }
  0x9f   : > { %v236_v24 = vmul.f32 0.2, %v234_v22  ;;  %v237_v25 = vmul.f32 0.2, %v235_v23 }
  0xa1   : > { %v239_v26 = vmax.f32 %v235_v23, %v237_v25  ;;  %v238_v27 = vmax.f32 %v234_v22, %v236_v24 }
  0xa3   : > { %v242_v28 = vrot.slane %v239_v26, 4 }
  0xa5   : > { %v244_v29 = vsel %vm243_vm0, %v238_v27, %v242_v28 }
  0xa6   : > { %246 = vst [vmem:[%s176_s16] sm:$0xff] %v244_v29 }
  0xa7   : > { %457 = shalt.err (!%p454_p5)
}
  0xa8   : > { %372 = dma.vmem_to_hbm [thread:$0]  (%p566_p4), %s264_s18, 128, %s266_s20, %s248_s12  }
  0xa9 PF: > { %p378_p6 = scmp.ge.s32.totalorder %s508_s14, 2  ;;  %s277_s30 = sand.u32 1, %s488_s9  }
  0xaa   : > { %s278_s3 = scalar_lea.sflag [#allocation3], %s277_s30 }
  0xab   : > { %p375_p7 = pnand %p378_p6, %p573_p8 }
  0xad   : > { %p376_p9 = pneg %p375_p7 }
  0xaf   : > { %483 = dma.done.wait (%p376_p9), %s278_s3, 128  }
  0xb0   : > { %485 = vsyncadd (%p376_p9), %s278_s3, 4294967168  ;;  %s15_s14 = sadd.s32 1, %s508_s14   ;;  %s631_s9 = smov %s492_s10 }
  0xb1   : > { %p12_p10 = scmp.ge.s32.totalorder %s15_s14, 4   ;;  %s632_s10 = smov %s496_s11 }
  0xb2   : > { %s633_s11 = smov %s579_s22  ;;  %s634_s12 = smov %s504_s13 }
  0xb3   : > { %s635_s13 = smov %s637_s17  ;;  %14 = sbr.rel (!%p12_p10) target bundleno = 4 (0x4), region = 66 }
  0xb8   :  { %284 = vsyncpa [#allocation3], 1 }
  0xb9   :  { %286 = vsyncpa [#allocation3 + $0x1], 1 }

</bundles_post_ra>
